<compile_context>
chip_gen: v5e
topology: v5e:2x2
jax: 0.10.0
libtpu: 0.0.40
codegen_flags: <defaults>
</compile_context>

<pallas_src>
import functools

import jax
import jax.numpy as jnp
from jax import lax
from jax.experimental import pallas as pl
from jax.experimental.pallas import tpu as pltpu


def _round_up(x, m):
    return ((x + m - 1) // m) * m


def _vmem_config():
    """(per-block byte budget, scoped vmem limit) derived from the hardware."""
    try:
        vmem = int(pltpu.get_tpu_info().vmem_capacity_bytes)
    except Exception:
        vmem = 64 * 1024 * 1024  # conservative fallback (v7x per-TC size)
    if vmem <= 64 * 1024 * 1024:          # v7x-class: 64 MiB VMEM per TC
        return 6 * 1024 * 1024, 40 * 1024 * 1024
    return 12 * 1024 * 1024, 64 * 1024 * 1024   # v5e / v6e: 128 MiB VMEM


def _col_tile(c, bytes_per_elem, budget, rows):
    """Channel tile: multiple of 128 when C is, else the full dim (no padding)."""
    if c % 128 == 0:
        max_cols = (budget // max(rows * bytes_per_elem, 1)) // 128 * 128
        return int(min(c, max(max_cols, 128)))
    # Narrow / odd C: use the full dim as the last block dim (allowed) instead
    # of inflating HBM traffic by padding to 128 lanes.
    return int(c)


def _row_tile(n, row_bytes, budget):
    """Row tile: full dim if it fits, else the largest multiple of 8 in budget."""
    if n * row_bytes <= budget:
        return int(n)
    tile = (budget // max(row_bytes, 1)) // 8 * 8
    return int(max(8, min(tile, _round_up(n, 8))))


# ----------------------------------------------------------------------------
# Kernels
# ----------------------------------------------------------------------------
def _scale_shift_kernel(x_ref, scale_ref, shift_ref, o_ref):
    """Streaming normalize: y = x * scale + shift (per-channel, pre-folded f32)."""
    y = x_ref[...] * scale_ref[...] + shift_ref[...]
    o_ref[...] = y.astype(o_ref.dtype)


def _bn_train_fused_kernel(x_ref, w_ref, b_ref, o_ref, bmean_ref, bvar_ref, *, eps):
    """Training BN, one channel tile with the full batch resident.

    Exact two-pass statistics (sum -> mean, then (x-mean)^2 -> var), all in f32.
    """
    x = x_ref[...].astype(jnp.float32)                  # (N, TILE_C)
    inv_n = jnp.float32(1.0 / x.shape[0])
    mean = jnp.sum(x, axis=0, keepdims=True) * inv_n    # (1, TILE_C)
    d = x - mean
    var = jnp.sum(d * d, axis=0, keepdims=True) * inv_n
    scale = w_ref[...].astype(jnp.float32) * lax.rsqrt(var + eps)
    o_ref[...] = (d * scale + b_ref[...].astype(jnp.float32)).astype(o_ref.dtype)
    bmean_ref[...] = mean
    bvar_ref[...] = var


def _bn_stats_kernel(nrows_ref, x_ref, sum_ref, sq_ref, *, mask_rows):
    """Per-channel sum / sum-of-squares; grid = (C tiles, N tiles[reduction])."""
    i = pl.program_id(1)

    @pl.when(i == 0)
    def _():
        sum_ref[...] = jnp.zeros_like(sum_ref)
        sq_ref[...] = jnp.zeros_like(sq_ref)

    x = x_ref[...].astype(jnp.float32)                  # (TILE_N, TILE_C)
    if mask_rows:
        row = lax.broadcasted_iota(jnp.int32, x.shape, 0) + i * x.shape[0]
        x = jnp.where(row < nrows_ref[0], x, 0.0)
    sum_ref[...] += jnp.sum(x, axis=0, keepdims=True)
    sq_ref[...] += jnp.sum(x * x, axis=0, keepdims=True)


# ----------------------------------------------------------------------------
# Wrapper (the "module")
# ----------------------------------------------------------------------------
class SuperBatchNorm1dPallas:
    def __init__(self, num_features, eps=1e-5, momentum=0.1,
                 track_running_stats=True, affine=True):
        self.super_num_features = num_features
        self.eps = eps
        self.momentum = momentum
        self.affine = affine
        self.track_running_stats = track_running_stats
        # reset_parameters(): weight=1, bias=0, running_mean=0, running_var=1
        self.weight = jnp.ones((num_features,), jnp.float32)
        self.bias = jnp.zeros((num_features,), jnp.float32)
        self.running_mean = jnp.zeros((num_features,), jnp.float32)
        self.running_var = jnp.ones((num_features,), jnp.float32)
        self.num_batches_tracked = 0
        self.sample_num_features = None
        self.samples = {}

    # --- supernet sampling (pure glue) ---
    def set_sample_config(self, sample_num_features=None):
        if sample_num_features is None:
            sample_num_features = self.super_num_features
        self.sample_num_features = sample_num_features
        self.samples['running_mean'] = self.running_mean[:sample_num_features]
        self.samples['running_var'] = self.running_var[:sample_num_features]
        self.samples['weight'] = self.weight[:sample_num_features]
        self.samples['bias'] = self.bias[:sample_num_features]

    # --- streaming y = x*scale + shift (shared by eval and two-pass train) ---
    def _normalize(self, x, scale, shift):
        n, c = x.shape
        block_budget, vmem_limit = _vmem_config()
        itemsize = x.dtype.itemsize
        tile_c = _col_tile(c, itemsize, block_budget, rows=8)
        tile_n = _row_tile(n, tile_c * itemsize, block_budget)
        grid = (pl.cdiv(n, tile_n), pl.cdiv(c, tile_c))

        scale2 = scale.reshape(1, c).astype(jnp.float32)
        shift2 = shift.reshape(1, c).astype(jnp.float32)

        return pl.pallas_call(
            _scale_shift_kernel,
            out_shape=jax.ShapeDtypeStruct((n, c), x.dtype),
            grid=grid,
            in_specs=[
                pl.BlockSpec((tile_n, tile_c), lambda i, j: (i, j)),
                pl.BlockSpec((1, tile_c), lambda i, j: (0, j)),
                pl.BlockSpec((1, tile_c), lambda i, j: (0, j)),
            ],
            out_specs=pl.BlockSpec((tile_n, tile_c), lambda i, j: (i, j)),
            compiler_params=pltpu.CompilerParams(
                dimension_semantics=("parallel", "parallel"),
                vmem_limit_bytes=vmem_limit,
            ),
            cost_estimate=pl.CostEstimate(
                flops=2 * n * c,
                transcendentals=0,
                bytes_accessed=2 * n * c * itemsize + 2 * c * 4,
            ),
        )(x, scale2, shift2)

    # --- eval-mode forward with running stats ---
    def _forward_eval(self, x):
        scale = self.samples['weight'] * lax.rsqrt(
            self.samples['running_var'] + self.eps)
        shift = self.samples['bias'] - self.samples['running_mean'] * scale
        return self._normalize(x, scale, shift)

    # --- batch-statistics forward (training, or eval w/o running stats) ---
    def _batch_stats_forward(self, x):
        n, c = x.shape
        block_budget, vmem_limit = _vmem_config()
        # Budget the fused path at 8 B/elem: in-kernel f32 upcast + centred copy.
        tile_c_fused = _col_tile(c, 8, block_budget, rows=max(n, 1))
        if n * tile_c_fused * 8 <= block_budget:
            return self._train_fused(x, tile_c_fused, vmem_limit)
        return self._train_two_pass(x, block_budget, vmem_limit)

    def _train_fused(self, x, tile_c, vmem_limit):
        n, c = x.shape
        w2 = self.samples['weight'].reshape(1, c).astype(jnp.float32)
        b2 = self.samples['bias'].reshape(1, c).astype(jnp.float32)
        grid = (pl.cdiv(c, tile_c),)

        y, bmean, bvar = pl.pallas_call(
            functools.partial(_bn_train_fused_kernel, eps=self.eps),
            out_shape=(
                jax.ShapeDtypeStruct((n, c), x.dtype),
                jax.ShapeDtypeStruct((1, c), jnp.float32),
                jax.ShapeDtypeStruct((1, c), jnp.float32),
            ),
            grid=grid,
            in_specs=[
                pl.BlockSpec((n, tile_c), lambda j: (0, j)),
                pl.BlockSpec((1, tile_c), lambda j: (0, j)),
                pl.BlockSpec((1, tile_c), lambda j: (0, j)),
            ],
            out_specs=(
                pl.BlockSpec((n, tile_c), lambda j: (0, j)),
                pl.BlockSpec((1, tile_c), lambda j: (0, j)),
                pl.BlockSpec((1, tile_c), lambda j: (0, j)),
            ),
            compiler_params=pltpu.CompilerParams(
                dimension_semantics=("parallel",),
                vmem_limit_bytes=vmem_limit,
            ),
            cost_estimate=pl.CostEstimate(
                flops=7 * n * c,
                transcendentals=c,
                bytes_accessed=2 * n * c * x.dtype.itemsize,
            ),
        )(x, w2, b2)
        return y, bmean[0], bvar[0]

    def _train_two_pass(self, x, block_budget, vmem_limit):
        """Large-N path: N is a pipelined reduction grid axis for sum/sumsq,
        then mean/var are folded to scale/shift and the streaming kernel
        normalizes.  x is never padded or copied in the wrapper."""
        n, c = x.shape
        itemsize = x.dtype.itemsize
        tile_c = _col_tile(c, itemsize, block_budget, rows=8)
        tile_n = _row_tile(n, tile_c * itemsize, block_budget)
        grid = (pl.cdiv(c, tile_c), pl.cdiv(n, tile_n))      # reduction (N) last
        mask_rows = (n % tile_n) != 0
        n_rows = jnp.asarray([n], jnp.int32)

        xsum, xsq = pl.pallas_call(
            functools.partial(_bn_stats_kernel, mask_rows=mask_rows),
            out_shape=(
                jax.ShapeDtypeStruct((1, c), jnp.float32),
                jax.ShapeDtypeStruct((1, c), jnp.float32),
            ),
            grid_spec=pltpu.PrefetchScalarGridSpec(
                num_scalar_prefetch=1,
                grid=grid,
                in_specs=[pl.BlockSpec((tile_n, tile_c),
                                       lambda j, i, nref: (i, j))],
                out_specs=(
                    pl.BlockSpec((1, tile_c), lambda j, i, nref: (0, j)),
                    pl.BlockSpec((1, tile_c), lambda j, i, nref: (0, j)),
                ),
            ),
            compiler_params=pltpu.CompilerParams(
                dimension_semantics=("parallel", "arbitrary"),
                vmem_limit_bytes=vmem_limit,
            ),
            cost_estimate=pl.CostEstimate(
                flops=3 * n * c,
                transcendentals=0,
                bytes_accessed=n * c * itemsize,
            ),
        )(n_rows, x)

        inv_n = jnp.float32(1.0 / n)
        bmean = xsum[0] * inv_n
        bvar = jnp.maximum(xsq[0] * inv_n - bmean * bmean, 0.0)
        # TODO(synk): E[x^2]-mean^2 can lose precision when |mean| >> std; an
        # extra (x-mean)^2 reduction pass would match F.batch_norm even closer.
        scale = self.samples['weight'] * lax.rsqrt(bvar + self.eps)
        shift = self.samples['bias'] - bmean * scale
        y = self._normalize(x, scale, shift)
        return y, bmean, bvar

    def _forward_train(self, x):
        n, c = x.shape
        y, bmean, bvar = self._batch_stats_forward(x)

        # Running-stat EMA update (host-side Python state, mirrors the PyTorch
        # module's in-place buffer mutation).
        # TODO(synk): not jit/trace-safe by design (stateful buffer update).
        if self.track_running_stats:
            self.num_batches_tracked += 1
            m = self.momentum if self.momentum is not None \
                else 1.0 / float(self.num_batches_tracked)
            unbiased = bvar * (n / max(n - 1, 1))
            new_rm = (1.0 - m) * self.samples['running_mean'] + m * bmean
            new_rv = (1.0 - m) * self.samples['running_var'] + m * unbiased
            self.running_mean = self.running_mean.at[:c].set(new_rm)
            self.running_var = self.running_var.at[:c].set(new_rv)
            self.samples['running_mean'] = new_rm
            self.samples['running_var'] = new_rv
        return y

    # --- forward ---
    def __call__(self, x, training=False):
        if training:
            return self._forward_train(x)
        if not self.track_running_stats:
            # F.batch_norm falls back to batch statistics when no running
            # stats exist, even in eval mode (no EMA update).
            y, _, _ = self._batch_stats_forward(x)
            return y
        return self._forward_eval(x)


# ----------------------------------------------------------------------------
# Reference (pure JAX) for verification
# ----------------------------------------------------------------------------
def _ref_bn(x, mean, var, w, b, eps):
    return ((x - mean[None, :]) * lax.rsqrt(var[None, :] + eps) * w[None, :]
            + b[None, :])


if __name__ == "__main__":
    key = jax.random.PRNGKey(0)
    N = 8                      # batch
    SUPER_C = 32               # super_num_features
    SAMPLE_C = 24              # sampled (elastic) feature dim

    bn = SuperBatchNorm1dPallas(SUPER_C, eps=1e-5, momentum=0.1)
    k1, k2, k3 = jax.random.split(key, 3)
    bn.weight = jax.random.normal(k1, (SUPER_C,), jnp.float32)
    bn.bias = jax.random.normal(k2, (SUPER_C,), jnp.float32)
    bn.set_sample_config(SAMPLE_C)

    x = jax.random.normal(k3, (N, SAMPLE_C), jnp.float32) * 2.0 + 0.5

    # ---- eval-mode forward (running stats), f32 ----
    y_eval = bn(x, training=False)
    jax.block_until_ready(y_eval)
    ref_eval = _ref_bn(x, bn.samples['running_mean'], bn.samples['running_var'],
                       bn.samples['weight'], bn.samples['bias'], bn.eps)
    assert y_eval.shape == x.shape and y_eval.dtype == x.dtype
    assert jnp.allclose(y_eval, ref_eval, atol=1e-5, rtol=1e-5)

    # ---- eval-mode forward, bf16 input (checks output-dtype cast) ----
    xb = x.astype(jnp.bfloat16)
    y_bf16 = bn(xb, training=False)
    jax.block_until_ready(y_bf16)
    assert y_bf16.dtype == jnp.bfloat16
    ref_bf16 = _ref_bn(xb.astype(jnp.float32), bn.samples['running_mean'],
                       bn.samples['running_var'], bn.samples['weight'],
                       bn.samples['bias'], bn.eps)
    assert jnp.allclose(y_bf16.astype(jnp.float32), ref_bf16, atol=0.1, rtol=0.1)

    # ---- training-mode forward (fused in-kernel batch stats) ----
    rm_before = bn.samples['running_mean']
    rv_before = bn.samples['running_var']
    y_train = bn(x, training=True)
    jax.block_until_ready(y_train)
    bm = jnp.mean(x, axis=0)
    bv = jnp.mean((x - bm[None, :]) ** 2, axis=0)
    ref_train = _ref_bn(x, bm, bv, bn.samples['weight'], bn.samples['bias'], bn.eps)
    assert y_train.shape == x.shape
    assert jnp.allclose(y_train, ref_train, atol=1e-4, rtol=1e-4)

    # running-stat EMA check (unbiased var, momentum=0.1)
    ref_rm = 0.9 * rm_before + 0.1 * bm
    ref_rv = 0.9 * rv_before + 0.1 * (bv * (N / (N - 1)))
    assert jnp.allclose(bn.samples['running_mean'], ref_rm, atol=1e-5, rtol=1e-5)
    assert jnp.allclose(bn.samples['running_var'], ref_rv, atol=1e-4, rtol=1e-4)

    # ---- two-pass (large-N) training path, exercised directly at small N ----
    bb, vl = _vmem_config()
    y2, bm2, bv2 = bn._train_two_pass(x, bb, vl)
    jax.block_until_ready(y2)
    assert jnp.allclose(bm2, bm, atol=1e-5, rtol=1e-5)
    assert jnp.allclose(bv2, bv, atol=1e-4, rtol=1e-4)
    assert jnp.allclose(y2, ref_train, atol=1e-4, rtol=1e-4)

    print("KERNEL_OK")
</pallas_src>

<mosaic_0001>
module attributes {stable_mosaic.version = 11 : i64} {
  func.func @_scale_shift_kernel(%arg0: i32, %arg1: i32, %arg2: memref<8x24xf32, #tpu.memory_space<vmem>>, %arg3: memref<1x24xf32, #tpu.memory_space<vmem>>, %arg4: memref<1x24xf32, #tpu.memory_space<vmem>>, %arg5: memref<8x24xf32, #tpu.memory_space<vmem>>) attributes {dimension_semantics = [#tpu.dimension_semantics<parallel>, #tpu.dimension_semantics<parallel>], iteration_bounds = array<i64: 1, 1>, scalar_prefetch = 0 : i64, scratch_operands = 0 : i64, tpu.core_type = #tpu.core_type<tc>, window_params = [{transform_indices = @transform_0, window_bounds = array<i64: 8, 24>}, {transform_indices = @transform_1, window_bounds = array<i64: 1, 24>}, {transform_indices = @transform_2, window_bounds = array<i64: 1, 24>}, {transform_indices = @transform_3, window_bounds = array<i64: 8, 24>}]} {
    %c0 = arith.constant 0 : index
    %c0_0 = arith.constant 0 : index
    %0 = vector.load %arg2[%c0, %c0_0] : memref<8x24xf32, #tpu.memory_space<vmem>>, vector<8x24xf32>
    %c0_1 = arith.constant 0 : index
    %c0_2 = arith.constant 0 : index
    %1 = vector.load %arg3[%c0_1, %c0_2] : memref<1x24xf32, #tpu.memory_space<vmem>>, vector<1x24xf32>
    %2 = vector.broadcast %1 : vector<1x24xf32> to vector<8x24xf32>
    %3 = arith.mulf %0, %2 : vector<8x24xf32>
    %c0_3 = arith.constant 0 : index
    %c0_4 = arith.constant 0 : index
    %4 = vector.load %arg4[%c0_3, %c0_4] : memref<1x24xf32, #tpu.memory_space<vmem>>, vector<1x24xf32>
    %5 = vector.broadcast %4 : vector<1x24xf32> to vector<8x24xf32>
    %6 = arith.addf %3, %5 : vector<8x24xf32>
    %c0_5 = arith.constant 0 : index
    %c0_6 = arith.constant 0 : index
    %7 = vector.load %arg5[%c0_5, %c0_6] : memref<8x24xf32, #tpu.memory_space<vmem>>, vector<8x24xf32>
    tpu.vector_store %arg5[%c0_5, %c0_6], %6 {strides = array<i32>} : memref<8x24xf32, #tpu.memory_space<vmem>>, vector<8x24xf32>,
    return
  }
  func.func @transform_0(%arg0: i32, %arg1: i32) -> (i32, i32) {
    %c0_i32 = arith.constant 0 : i32
    return %arg0, %arg1 : i32, i32
  }
  func.func @transform_1(%arg0: i32, %arg1: i32) -> (i32, i32) {
    %c0_i32 = arith.constant 0 : i32
    %c0_i32_0 = arith.constant 0 : i32
    return %c0_i32, %arg1 : i32, i32
  }
  func.func @transform_2(%arg0: i32, %arg1: i32) -> (i32, i32) {
    %c0_i32 = arith.constant 0 : i32
    %c0_i32_0 = arith.constant 0 : i32
    return %c0_i32, %arg1 : i32, i32
  }
  func.func @transform_3(%arg0: i32, %arg1: i32) -> (i32, i32) {
    %c0_i32 = arith.constant 0 : i32
    return %arg0, %arg1 : i32, i32
  }
}

</mosaic_0001>

<bundles_post_ra>
// kernel: tpu_custom_call.1
= control target key start
LH: loop header
LB: loop body
LE: loop exit
PB: predicated region body
PF: predicated region fallthrough
CT: control target
= control target key end

     0   :  { %8 = vsyncpa [#allocation3], 0  ;;  %s192_s0 = inlined_call_operand.hbm [shape: f32[8,24], index: 0, kind: input, shape index: {}]   ;;  %s193_s1 = inlined_call_operand.hbm [shape: f32[1,24], index: 1, kind: input, shape index: {}]   ;;  %s194_s2 = inlined_call_operand.vmem [shape: f32[1,24], index: 2, kind: input, shape index: {}]   ;;  %s195_s3 = inlined_call_operand.hbm [shape: f32[8,24], index: 3, kind: output, shape index: {}]  }
   0x1   :  { %9 = vsyncpa [#allocation6], 0 }
   0x2   :  { %10 = vsyncpa [#allocation4], 0  ;;  %s16_s14 = sshll.u32 %s192_s0, 4  ;;  %s157_s15 = smov [#allocation2]   ;;  %s17_s14 = int_to_ptr.hbm [resolvable:$true] %s16_s14 }
   0x3   :  { %s18_s16 = sshll.u32 %s157_s15, 4  ;;  %s27_s19 = sshll.u32 %s193_s1, 4  ;;  %s19_s16 = int_to_ptr.vmem [resolvable:$true] %s18_s16  ;;  %s28_s19 = int_to_ptr.hbm [resolvable:$true] %s27_s19 }
   0x4   :  { %21 = dma.hbm_to_vmem [thread:$0]  %s17_s14, 128, %s19_s16, [#allocation3]  }
   0x5   :  { %s158_s20 = smov [#allocation5]  }
   0x6   :  { %s29_s21 = sshll.u32 %s158_s20, 4  ;;  %s30_s21 = int_to_ptr.vmem [resolvable:$true] %s29_s21 }
   0x7   :  { %32 = dma.hbm_to_vmem [thread:$0]  %s28_s19, 16, %s30_s21, [#allocation6]  }
   0x8   :  { %151 = dma.done.wait [#allocation3], 128  }
   0x9   :  { %152 = vsyncadd [#allocation3], 4294967168 }
   0xa   :  { %153 = dma.done.wait [#allocation6], 16  }
   0xb   :  { %154 = vsyncadd [#allocation6], 4294967280  ;;  %v43_v0 = vld [vmem:[#allocation2] sm:$0xff]  ;;  %v77_v1 = vld [vmem:[#allocation5] ss:$0 sm:$0xff]  ;;  %s159_s23 = smov [#allocation7]  }
   0xc   :  { %v78_v2 = vld [vmem:[%s194_s2] ss:$0 sm:$0xff]  ;;  %s61_s24 = sshll.u32 %s159_s23, 4  ;;  %s63_s26 = sshll.u32 %s195_s3, 4  ;;  %v48_v3 = vmul.f32 %v77_v1, %v43_v0  ;;  %vm54_vm0 = vcmask 195584   ;;  %s62_s24 = int_to_ptr.vmem [resolvable:$true] %s61_s24  ;;  %s64_s26 = int_to_ptr.hbm [resolvable:$true] %s63_s26 }
   0xe   :  { %v53_v4 = vadd.f32 %v78_v2, %v48_v3 }
  0x10   :  { %55 = vst.msk [vmem:[#allocation7] sm:$0xff] %vm54_vm0, %v53_v4 }
  0x11   :  { %66 = dma.vmem_to_hbm [thread:$0]  %s62_s24, 128, %s64_s26, [#allocation4]  }
  0x12   :  { %155 = dma.done.wait [#allocation4], 128  }
  0x13   :  { %156 = vsyncadd [#allocation4], 4294967168 }
  0x14   :  { %71 = vsyncpa [#allocation3], 1 }
  0x15   :  { %72 = vsyncpa [#allocation6], 1 }
  0x16   :  { %73 = vsyncpa [#allocation4], 1 }

</bundles_post_ra>
